<compile_context>
chip_gen: v7x
topology: tpu7x:2x2x1
jax: 0.10.0
libtpu: 0.0.40
codegen_flags: <defaults>
</compile_context>

<pallas_src>
import functools

import jax
import jax.numpy as jnp
from jax.experimental import pallas as pl
from jax.experimental.pallas import tpu as pltpu


def _round_up(x, m):
    return ((x + m - 1) // m) * m


def _luong_attn_kernel(dec_ref, enc_ref, w_ref, attn_ref, wts_ref, *, enc_len):
    # dec (bb, Dp, Hd_p), enc (bb, Lp, He_p), W (Hd_p, He_p) -- all zero padded,
    # W shared across the grid.
    dec = dec_ref[...]
    enc = enc_ref[...]
    w = w_ref[...]
    bb, dp, hd = dec.shape

    # Projection: fold batch into the M dim -> one dense (bb*Dp, Hd) x (Hd, He) MXU tile.
    proj = jax.lax.dot_general(
        dec.reshape(bb * dp, hd), w,
        dimension_numbers=(((1,), (0,)), ((), ())),
        preferred_element_type=jnp.float32,
    ).reshape(bb, dp, -1)                                   # (bb, Dp, He_p)

    # score = proj @ enc^T, expressed as a batched contraction over the last dim
    # of both operands (no transpose materialized).
    score = jax.lax.dot_general(
        proj, enc,
        dimension_numbers=(((2,), (2,)), ((0,), (0,))),
        preferred_element_type=jnp.float32,
    )                                                       # (bb, Dp, Lp)

    # Mask zero-padded encoder positions so they get ~0 softmax weight.
    col = jax.lax.broadcasted_iota(jnp.int32, score.shape, 2)
    score = jnp.where(col < enc_len, score, jnp.float32(-1e9))

    # Softmax over enc_len (last axis).
    m = jnp.max(score, axis=-1, keepdims=True)
    e = jnp.exp(score - m)
    denom = jnp.sum(e, axis=-1, keepdims=True)
    p = e * pl.reciprocal(denom, approx=True)               # (bb, Dp, Lp)

    wts_ref[...] = p.astype(wts_ref.dtype)

    # attention = weights @ encoder_outputs -> (bb, Dp, He_p), batched contraction.
    attn = jax.lax.dot_general(
        p, enc,
        dimension_numbers=(((2,), (1,)), ((0,), (0,))),
        preferred_element_type=jnp.float32,
    )
    attn_ref[...] = attn.astype(attn_ref.dtype)


def luong_attention(encoder_outputs, decoder_outputs, general_weights, *, batch_block=None):
    B, enc_len, H_enc = encoder_outputs.shape
    Bd, dec_len, H_dec = decoder_outputs.shape
    assert B == Bd
    assert general_weights.shape == (H_dec, H_enc)

    # Lane-dense padded sizes (last dims -> multiples of 128, sublane dims -> 8).
    Lp = _round_up(enc_len, 128)
    Hep = _round_up(H_enc, 128)
    Hdp = _round_up(H_dec, 128)
    Dp = _round_up(dec_len, 8)

    enc_p = jnp.pad(encoder_outputs.astype(jnp.float32),
                    ((0, 0), (0, Lp - enc_len), (0, Hep - H_enc)))
    dec_p = jnp.pad(decoder_outputs.astype(jnp.float32),
                    ((0, 0), (0, Dp - dec_len), (0, Hdp - H_dec)))
    w_p = jnp.pad(general_weights.astype(jnp.float32),
                  ((0, Hdp - H_dec), (0, Hep - H_enc)))

    # Pick a batch block: pack several batch elements per grid step for MXU row
    # occupancy, but keep >=2 grid steps so v7x's two TensorCores both get work.
    if batch_block is None:
        batch_block = 1
        for cand in range(2, B + 1):
            if B % cand == 0 and (B // cand) >= 2 and cand * Dp <= 512:
                batch_block = cand
    assert B % batch_block == 0
    grid = (B // batch_block,)

    kernel = functools.partial(_luong_attn_kernel, enc_len=enc_len)

    attn_p, wts_p = pl.pallas_call(
        kernel,
        out_shape=(
            jax.ShapeDtypeStruct((B, Dp, Hep), jnp.float32),
            jax.ShapeDtypeStruct((B, Dp, Lp), jnp.float32),
        ),
        grid=grid,
        in_specs=[
            pl.BlockSpec((batch_block, Dp, Hdp), lambda i: (i, 0, 0)),   # decoder_outputs
            pl.BlockSpec((batch_block, Lp, Hep), lambda i: (i, 0, 0)),   # encoder_outputs
            pl.BlockSpec((Hdp, Hep), lambda i: (0, 0)),                  # general_weights
        ],
        out_specs=(
            pl.BlockSpec((batch_block, Dp, Hep), lambda i: (i, 0, 0)),
            pl.BlockSpec((batch_block, Dp, Lp), lambda i: (i, 0, 0)),
        ),
        compiler_params=pltpu.CompilerParams(
            dimension_semantics=("parallel",),
            vmem_limit_bytes=64 * 1024 * 1024,
        ),
    )(dec_p, enc_p, w_p)

    # Strip padding and match PyTorch post-processing:
    # attention_vector.permute(1, 0, 2) -> (dec_len, B, H_enc)
    attention_vector = jnp.transpose(attn_p[:, :dec_len, :H_enc], (1, 0, 2))
    # weights.view(-1, enc_len) -> (B*dec_len, enc_len)
    weights_flat = wts_p[:, :dec_len, :enc_len].reshape(B * dec_len, enc_len)
    return attention_vector, weights_flat


def _reference(encoder_outputs, decoder_outputs, general_weights):
    # Pure-JAX mirror of the PyTorch forward (enc_mask=None).
    B, enc_len, H_enc = encoder_outputs.shape
    _, dec_len, _ = decoder_outputs.shape
    enc_t = jnp.transpose(encoder_outputs, (0, 2, 1))                      # (B, H_enc, enc_len)
    score = jnp.einsum("bdh,he->bde", decoder_outputs, general_weights)    # (B, dec_len, H_enc)
    score = jnp.einsum("bde,bel->bdl", score, enc_t)                       # (B, dec_len, enc_len)
    weights = jax.nn.softmax(score.reshape(-1, enc_len), axis=1).reshape(B, dec_len, enc_len)
    attn = jnp.einsum("bdl,blh->bdh", weights, encoder_outputs)            # (B, dec_len, H_enc)
    return jnp.transpose(attn, (1, 0, 2)), weights.reshape(-1, enc_len)


if __name__ == "__main__":
    B, enc_len, dec_len = 2, 8, 8
    H_enc, H_dec = 32, 32

    key = jax.random.PRNGKey(0)
    k1, k2, k3 = jax.random.split(key, 3)
    encoder_outputs = jax.random.normal(k1, (B, enc_len, H_enc), dtype=jnp.float32)
    decoder_outputs = jax.random.normal(k2, (B, dec_len, H_dec), dtype=jnp.float32)
    # Deterministic parameter init (torch.randn equivalent shape).
    general_weights = jax.random.normal(k3, (H_dec, H_enc), dtype=jnp.float32)

    attn_vec, weights_flat = luong_attention(encoder_outputs, decoder_outputs, general_weights)
    attn_vec = jax.block_until_ready(attn_vec)
    weights_flat = jax.block_until_ready(weights_flat)

    ref_attn, ref_w = _reference(encoder_outputs, decoder_outputs, general_weights)
    assert attn_vec.shape == (dec_len, B, H_enc)
    assert weights_flat.shape == (B * dec_len, enc_len)
    # approx=True reciprocal in the softmax denominator -> ~1e-3 relative tolerance.
    assert jnp.allclose(attn_vec, ref_attn, atol=2e-3, rtol=2e-3)
    assert jnp.allclose(weights_flat, ref_w, atol=2e-3, rtol=2e-3)

    print("KERNEL_OK")
</pallas_src>

<mosaic_0001>
module attributes {stable_mosaic.version = 11 : i64} {
  func.func @_luong_attn_kernel(%arg0: i32, %arg1: memref<1x8x128xf32, #tpu.memory_space<vmem>>, %arg2: memref<1x128x128xf32, #tpu.memory_space<vmem>>, %arg3: memref<128x128xf32, #tpu.memory_space<vmem>>, %arg4: memref<1x8x128xf32, #tpu.memory_space<vmem>>, %arg5: memref<1x8x128xf32, #tpu.memory_space<vmem>>) attributes {dimension_semantics = [#tpu.dimension_semantics<parallel>], iteration_bounds = array<i64: 2>, scalar_prefetch = 0 : i64, scratch_operands = 0 : i64, tpu.core_type = #tpu.core_type<tc>, window_params = [{transform_indices = @transform_0, window_bounds = array<i64: 1, 8, 128>}, {transform_indices = @transform_1, window_bounds = array<i64: 1, 128, 128>}, {pipeline_mode = #tpu.pipeline_mode<synchronous>, transform_indices = @transform_2, window_bounds = array<i64: 128, 128>}, {transform_indices = @transform_3, window_bounds = array<i64: 1, 8, 128>}, {transform_indices = @transform_4, window_bounds = array<i64: 1, 8, 128>}]} {
    %c0 = arith.constant 0 : index
    %c0_0 = arith.constant 0 : index
    %c0_1 = arith.constant 0 : index
    %0 = vector.load %arg1[%c0, %c0_0, %c0_1] : memref<1x8x128xf32, #tpu.memory_space<vmem>>, vector<1x8x128xf32>
    %c0_2 = arith.constant 0 : index
    %c0_3 = arith.constant 0 : index
    %c0_4 = arith.constant 0 : index
    %1 = vector.load %arg2[%c0_2, %c0_3, %c0_4] : memref<1x128x128xf32, #tpu.memory_space<vmem>>, vector<1x128x128xf32>
    %c0_5 = arith.constant 0 : index
    %c0_6 = arith.constant 0 : index
    %2 = vector.load %arg3[%c0_5, %c0_6] : memref<128x128xf32, #tpu.memory_space<vmem>>, vector<128x128xf32>
    %3 = vector.shape_cast %0 : vector<1x8x128xf32> to vector<8x128xf32>
    %cst = arith.constant dense<0.000000e+00> : vector<8x128xf32>
    %4 = tpu.matmul %3, %2, %cst {dimension_numbers = #tpu.dot_dimension_numbers<[1], [0], [0], [1], [0, 0, 1, 1], [], []>} : vector<8x128xf32>, vector<128x128xf32>, vector<8x128xf32> -> vector<8x128xf32>
    %5 = vector.shape_cast %4 : vector<8x128xf32> to vector<1x8x128xf32>
    %cst_7 = arith.constant dense<0.000000e+00> : vector<1x8x128xf32>
    %6 = tpu.matmul %5, %1, %cst_7 {dimension_numbers = #tpu.dot_dimension_numbers<[2], [2], [1], [1], [0, 0, 0, 1, 1, 1], [0], [0]>} : vector<1x8x128xf32>, vector<1x128x128xf32>, vector<1x8x128xf32> -> vector<1x8x128xf32>
    %7 = tpu.iota {dimensions = array<i32: 2>} : vector<1x8x128xi32>
    %c8_i32 = arith.constant 8 : i32
    %8 = vector.broadcast %c8_i32 : i32 to vector<1x8x128xi32>
    %9 = arith.cmpi slt, %7, %8 : vector<1x8x128xi32>
    %cst_8 = arith.constant -1.000000e+09 : f32
    %10 = vector.broadcast %cst_8 : f32 to vector<1x8x128xf32>
    %11 = arith.select %9, %6, %10 : vector<1x8x128xi1>, vector<1x8x128xf32>
    %cst_9 = arith.constant dense<0xFF800000> : vector<1x8xf32>
    %12 = vector.multi_reduction <maximumf>, %11, %cst_9 [2] : vector<1x8x128xf32> to vector<1x8xf32>
    %13 = vector.shape_cast %12 : vector<1x8xf32> to vector<1x8x1xf32>
    %14 = vector.broadcast %13 : vector<1x8x1xf32> to vector<1x8x128xf32>
    %15 = arith.subf %11, %14 : vector<1x8x128xf32>
    %16 = math.exp %15 : vector<1x8x128xf32>
    %cst_10 = arith.constant dense<0.000000e+00> : vector<1x8xf32>
    %17 = vector.multi_reduction <add>, %16, %cst_10 [2] : vector<1x8x128xf32> to vector<1x8xf32>
    %18 = vector.shape_cast %17 : vector<1x8xf32> to vector<1x8x1xf32>
    %19 = tpu.reciprocal %18 {approx = true} : vector<1x8x1xf32> -> vector<1x8x1xf32>
    %20 = vector.broadcast %19 : vector<1x8x1xf32> to vector<1x8x128xf32>
    %21 = arith.mulf %16, %20 : vector<1x8x128xf32>
    %c0_11 = arith.constant 0 : index
    %c0_12 = arith.constant 0 : index
    %c0_13 = arith.constant 0 : index
    %22 = vector.load %arg5[%c0_11, %c0_12, %c0_13] : memref<1x8x128xf32, #tpu.memory_space<vmem>>, vector<1x8x128xf32>
    tpu.vector_store %arg5[%c0_11, %c0_12, %c0_13], %21 {strides = array<i32>} : memref<1x8x128xf32, #tpu.memory_space<vmem>>, vector<1x8x128xf32>,
    %cst_14 = arith.constant dense<0.000000e+00> : vector<1x8x128xf32>
    %23 = tpu.matmul %21, %1, %cst_14 {dimension_numbers = #tpu.dot_dimension_numbers<[2], [1], [1], [2], [0, 0, 0, 1, 1, 2], [0], [0]>} : vector<1x8x128xf32>, vector<1x128x128xf32>, vector<1x8x128xf32> -> vector<1x8x128xf32>
    %c0_15 = arith.constant 0 : index
    %c0_16 = arith.constant 0 : index
    %c0_17 = arith.constant 0 : index
    %24 = vector.load %arg4[%c0_15, %c0_16, %c0_17] : memref<1x8x128xf32, #tpu.memory_space<vmem>>, vector<1x8x128xf32>
    tpu.vector_store %arg4[%c0_15, %c0_16, %c0_17], %23 {strides = array<i32>} : memref<1x8x128xf32, #tpu.memory_space<vmem>>, vector<1x8x128xf32>,
    return
  }
  func.func @transform_0(%arg0: i32) -> (i32, i32, i32) {
    %c0_i32 = arith.constant 0 : i32
    %c0_i32_0 = arith.constant 0 : i32
    %c0_i32_1 = arith.constant 0 : i32
    return %arg0, %c0_i32, %c0_i32_0 : i32, i32, i32
  }
  func.func @transform_1(%arg0: i32) -> (i32, i32, i32) {
    %c0_i32 = arith.constant 0 : i32
    %c0_i32_0 = arith.constant 0 : i32
    %c0_i32_1 = arith.constant 0 : i32
    return %arg0, %c0_i32, %c0_i32_0 : i32, i32, i32
  }
  func.func @transform_2(%arg0: i32) -> (i32, i32) {
    %c0_i32 = arith.constant 0 : i32
    %c0_i32_0 = arith.constant 0 : i32
    %c0_i32_1 = arith.constant 0 : i32
    return %c0_i32, %c0_i32_0 : i32, i32
  }
  func.func @transform_3(%arg0: i32) -> (i32, i32, i32) {
    %c0_i32 = arith.constant 0 : i32
    %c0_i32_0 = arith.constant 0 : i32
    %c0_i32_1 = arith.constant 0 : i32
    return %arg0, %c0_i32, %c0_i32_0 : i32, i32, i32
  }
  func.func @transform_4(%arg0: i32) -> (i32, i32, i32) {
    %c0_i32 = arith.constant 0 : i32
    %c0_i32_0 = arith.constant 0 : i32
    %c0_i32_1 = arith.constant 0 : i32
    return %arg0, %c0_i32, %c0_i32_0 : i32, i32, i32
  }
}

</mosaic_0001>

<bundles_post_ra>
// kernel: tpu_custom_call.1
= control target key start
LH: loop header
LB: loop body
LE: loop exit
PB: predicated region body
PF: predicated region fallthrough
CT: control target
= control target key end

     0   :  { %10 = vsyncpa [#allocation3], 0  ;;  %s1591_s0 = inlined_call_operand.hbm [shape: f32[2,8,128], index: 0, kind: input, shape index: {}]   ;;  %s1592_s1 = inlined_call_operand.hbm [shape: f32[2,128,128], index: 1, kind: input, shape index: {}]   ;;  %s1593_s2 = inlined_call_operand.hbm [shape: f32[128,128], index: 2, kind: input, shape index: {}]   ;;  %s1594_s3 = inlined_call_operand.hbm [shape: f32[2,8,128], index: 3, kind: output, shape index: {0}]   ;;  %s1595_s4 = inlined_call_operand.hbm [shape: f32[2,8,128], index: 4, kind: output, shape index: {1}]  }
   0x1   :  { %12 = vsyncpa [#allocation3 + $0x1], 0 }
   0x2   :  { %13 = vsyncpa [#allocation6], 0 }
   0x3   :  { %15 = vsyncpa [#allocation6 + $0x1], 0 }
   0x4   :  { %16 = vsyncpa [#allocation4], 0 }
   0x5   :  { %18 = vsyncpa [#allocation4 + $0x1], 0 }
   0x6   :  { %19 = vsyncpa [#allocation10], 0 }
   0x7   :  { %21 = vsyncpa [#allocation10 + $0x1], 0  ;;  %s1259_s15 = smov 0   ;;  %s1261_s16 = smov 0  }
   0x8   :  { %s1263_s17 = smov 0   ;;  %s1265_s18 = smov 0  }
   0x9 LB: > { %s1280_s19 = sadd.s32 4294967295, %s1222_s18   ;;  %s702_s20 = sadd.s32 4294967294, %s1222_s18   ;;  %s1222_s18 = sphi %s1265_s18, %s1619_s18   ;;  %s1218_s17 = sphi %s1263_s17, %s1618_s17   ;;  %s1214_s16 = sphi %s1261_s16, %s1617_s16   ;;  %s1210_s15 = sphi %s1259_s15, %s1616_s15  }
   0xa   : > { %p47_p0 = scmp.ne.s32.totalorder %s1214_s16, %s1210_s15  ;;  %p1596_p1 = scmp.eq.s32.totalorder %s1280_s19, 0 }
   0xb   : > { %p124_p3 = scmp.eq.s32.totalorder %s702_s20, 1  ;;  %p703_p5 = scmp.ge.s32.totalorder %s1222_s18, 1 }
   0xc   : > { %p1289_p4 = por %p1596_p1, %p47_p0  ;;  %p157_p7 = scmp.lt.s32.totalorder %s1222_s18, 3 }
   0xd   : > { %p1294_p6 = por %p124_p3, %p47_p0  ;;  %s1224_s24 = smov [#allocation7]  }
   0xe   : > { %s1601_s21 = scalar_select %p1289_p4, 1, 0 }
   0xf   : > { %s1602_s22 = scalar_select %p1294_p6, 1, 0 }
  0x10   : > { %p1299_p8 = pnand %p703_p5, %p157_p7  ;;  %s169_s25 = sshll.u32 %s1224_s24, 4  ;;  %s1303_s25 = int_to_ptr.vmem [resolvable:$true] %s169_s25 }
  0x11   : > { %s1315_s27 = sadd.s32 1, %s1222_s18   ;;  %s34_s28 = sadd.s32 1, %s1218_s17 }
  0x12   : > { %s1603_s23 = scalar_select %p1299_p8, 1, 0 }
  0x13   : > { %p964_p9 = pneg %p1299_p8  ;;  %s31_s29 = ssub.s32 %s1222_s18, %s1315_s27 }
  0x14   : > { %s1028_s6 = scalar_lea.hbm %s1593_s2, 2048 }
  0x15   : > { %p1310_p11 = pnand %p964_p9, %p1596_p1  ;;  %p1029_p12 = scmp.ne.s32.totalorder %s1593_s2, %s1028_s6 }
  0x16   : > { %p1035_p5 = scmp.lt.u32.totalorder %s1028_s6, %s1593_s2 }
  0x17   : > { %p1030_p13 = pneg %p1310_p11 }
  0x19   : > { %p1031_p0 = pnand %p1030_p13, %p1029_p12 }
  0x1b   : > { %p1032_p3 = pneg %p1031_p0 }
  0x1d   : > { %p1037_p7 = pnand %p1035_p5, %p1032_p3 }
  0x1f   : > { %1040 = shalt.err (!%p1037_p7)
}
  0x20   : > { %s1041_s11 = scalar_lea.vmem %s1303_s25, 2048  ;;  %p1049_p2 = scmp.lt.s32.totalorder %s1303_s25, %s1303_s25 }
  0x21   : > { %p1042_p9 = scmp.ne.s32.totalorder %s1303_s25, %s1041_s11  ;;  %p1050_p6 = scmp.lt.s32.totalorder %s1041_s11, %s1041_s11 }
  0x23   : > { %p1044_p10 = pnand %p1042_p9, %p1030_p13  ;;  %p1051_p4 = por %p1050_p6, %p1049_p2 }
  0x25   : > { %p1045_p1 = pneg %p1044_p10 }
  0x27   : > { %p1052_p8 = pnand %p1051_p4, %p1045_p1 }
  0x29   : > { %1055 = shalt.err (!%p1052_p8)
}
  0x2a   : > { %s1599_s12 = smov 128   ;;  %s1600_s13 = smov 8  }
  0x2b   : > { %967 = dma.hbm_to_vmem [thread:$0]  (!%p1310_p11), %s1593_s2, 2048, %s1303_s25, [#allocation6], %s1599_s12, %s1599_s12, %s1600_s13  }
  0x2c   : > { %p32_p1 = scmp.eq.s32.totalorder %s31_s29, 0  ;;  %p41_p2 = scmp.ne.s32.totalorder %s1218_s17, %s1214_s16 }
  0x2d   : > { %p42_p4 = scmp.eq.s32.totalorder %s1222_s18, 0  ;;  %p983_p6 = scmp.lt.s32.totalorder %s1222_s18, 2 }
  0x2e   : > { %s1349_s24 = scalar_select %p32_p1, %s1218_s17, %s34_s28  }
  0x2f   : > { %p43_p8 = por %p42_p4, %p41_p2  ;;  %p1605_p10 = scmp.eq.s32.totalorder %s1280_s19, 1 }
  0x30   : > { %s1358_s26 = sand.u32 1, %s1218_s17   ;;  %s707_s5 = sshll.u32 %s1222_s18, 7 }
  0x31   : > { %p1353_p12 = por %p1605_p10, %p41_p2  ;;  %s706_s6 = sshll.u32 %s1358_s26, 3 }
  0x32   : > { %s1365_s7 = scalar_lea.hbm %s1591_s0, %s707_s5  ;;  %s187_s28 = scalar_lea.vmem [#allocation2], %s706_s6 }
  0x33   : > { %s194_s8 = sshll.u32 %s187_s28, 4  ;;  %p1367_p11 = pnand %p983_p6, %p43_p8  ;;  %s1371_s8 = int_to_ptr.vmem [resolvable:$true] %s194_s8 }
  0x34   : > { %s708_s10 = sshll.u32 %s1358_s26, 7  ;;  %s184_s11 = scalar_lea.sflag [#allocation3], %s1358_s26 }
  0x35   : > { %s1056_s14 = scalar_lea.hbm %s1365_s7, 128  ;;  %p1058_p0 = pneg %p1367_p11 }
  0x36   : > { %p1057_p13 = scmp.ne.s32.totalorder %s1365_s7, %s1056_s14  ;;  %s1061_s6 = scalar_lea.hbm %s1591_s0, 256 }
  0x37   : > { %p1062_p7 = scmp.lt.u32.totalorder %s1365_s7, %s1591_s0  ;;  %p1063_p9 = scmp.lt.u32.totalorder %s1061_s6, %s1056_s14 }
  0x38   : > { %p1059_p3 = pnand %p1058_p0, %p1057_p13  ;;  %p1065_p2 = scmp.lt.u32.totalorder %s1056_s14, %s1365_s7 }
  0x39   : > { %p1064_p1 = por %p1063_p9, %p1062_p7 }
  0x3a   : > { %p1060_p5 = pneg %p1059_p3 }
  0x3b   : > { %p1066_p4 = por %p1065_p2, %p1064_p1 }
  0x3d   : > { %p1067_p6 = pnand %p1066_p4, %p1060_p5 }
  0x3f   : > { %1070 = shalt.err (!%p1067_p6)
}
  0x40   : > { %s1071_s28 = scalar_lea.vmem %s1371_s8, 128  ;;  %s1227_s20 = smov [#allocation2]  }
  0x41   : > { %p1072_p8 = scmp.ne.s32.totalorder %s1371_s8, %s1071_s28  ;;  %s1076_s5 = sshll.u32 %s1227_s20, 4  ;;  %s1077_s5 = int_to_ptr.vmem [resolvable:$false] %s1076_s5 }
  0x42   : > { %s1078_s25 = scalar_lea.vmem %s1077_s5, 256  ;;  %p1079_p3 = scmp.lt.s32.totalorder %s1371_s8, %s1077_s5 }
  0x43   : > { %p1074_p10 = pnand %p1072_p8, %p1058_p0  ;;  %p1080_p7 = scmp.lt.s32.totalorder %s1078_s25, %s1071_s28 }
  0x45   : > { %p1075_p13 = pneg %p1074_p10  ;;  %p1081_p9 = por %p1080_p7, %p1079_p3 }
  0x47   : > { %p1082_p1 = pnand %p1081_p9, %p1075_p13 }
  0x49   : > { %1085 = shalt.err (!%p1082_p1)
}
  0x4a   : > { %971 = dma.hbm_to_vmem [thread:$0]  (!%p1367_p11), %s1365_s7, 128, %s1371_s8, %s184_s11  }
  0x4b   : > { %s205_s14 = scalar_lea.vmem [#allocation5], %s708_s10  ;;  %s201_s29 = sand.u32 1, %s1222_s18  }
  0x4c   : > { %s212_s6 = sshll.u32 %s205_s14, 4  ;;  %s723_s20 = sshll.u32 %s1222_s18, 11  ;;  %s1403_s6 = int_to_ptr.vmem [resolvable:$true] %s212_s6 }
  0x4d   : > { %s1409_s25 = scalar_lea.hbm %s1592_s1, %s723_s20  ;;  %s1411_s12 = scalar_lea.sflag [#allocation6], %s201_s29 }
  0x4e   : > { %s1086_s13 = scalar_lea.hbm %s1409_s25, 2048  ;;  %s1091_s8 = scalar_lea.hbm %s1592_s1, 4096 }
  0x4f   : > { %p1087_p5 = scmp.ne.s32.totalorder %s1409_s25, %s1086_s13  ;;  %p1092_p6 = scmp.lt.u32.totalorder %s1409_s25, %s1592_s1 }
  0x50   : > { %p1093_p8 = scmp.lt.u32.totalorder %s1091_s8, %s1086_s13  ;;  %p1095_p13 = scmp.lt.u32.totalorder %s1086_s13, %s1409_s25 }
  0x51   : > { %p1089_p2 = pnand %p1087_p5, %p1058_p0 }
  0x52   : > { %p1094_p10 = por %p1093_p8, %p1092_p6 }
  0x53   : > { %p1090_p4 = pneg %p1089_p2 }
  0x54   : > { %p1096_p3 = por %p1095_p13, %p1094_p10 }
  0x56   : > { %p1097_p7 = pnand %p1096_p3, %p1090_p4 }
  0x58   : > { %1100 = shalt.err (!%p1097_p7)
}
  0x59   : > { %s1101_s14 = scalar_lea.vmem %s1403_s6, 2048  ;;  %s1228_s29 = smov [#allocation5]  }
  0x5a   : > { %p1102_p9 = scmp.ne.s32.totalorder %s1403_s6, %s1101_s14  ;;  %s1106_s20 = sshll.u32 %s1228_s29, 4  ;;  %s1107_s20 = int_to_ptr.vmem [resolvable:$false] %s1106_s20 }
  0x5b   : > { %s1108_s28 = scalar_lea.vmem %s1107_s20, 4096  ;;  %p1109_p2 = scmp.lt.s32.totalorder %s1403_s6, %s1107_s20 }
  0x5c   : > { %p1104_p1 = pnand %p1102_p9, %p1058_p0  ;;  %p1110_p6 = scmp.lt.s32.totalorder %s1108_s28, %s1101_s14 }
  0x5e   : > { %p1105_p5 = pneg %p1104_p1  ;;  %p1111_p8 = por %p1110_p6, %p1109_p2 }
  0x60   : > { %p1112_p10 = pnand %p1111_p8, %p1105_p5 }
  0x62   : > { %1115 = shalt.err (!%p1112_p10)
}
  0x63   : > { %s1608_s13 = smov 8   ;;  %s1609_s5 = smov 128  }
  0x64   : > { %974 = dma.hbm_to_vmem [thread:$0]  (!%p1367_p11), %s1409_s25, 2048, %s1403_s6, %s1411_s12, %s1609_s5, %s1609_s5, %s1608_s13  }
  0x65   : > { %p1610_p0 = scmp.ne.s32.totalorder %s1603_s23, 0 }
  0x66   : > { %s1443_s26 = sand.u32 (!%p1610_p0), 1, %s1214_s16   ;;  %p1611_p4 = scmp.ne.s32.totalorder (!%p1610_p0), %s1601_s21, 0 }
  0x67   : > { %224 = sbr.rel (%p1610_p0) target bundleno = 1114 (0x45a), region = 32  ;;  %s1446_s7 = sshll.u32 (!%p1610_p0), %s1443_s26, 3 }
  0x68   : > { %s227_s9 = scalar_lea.sflag (!%p1610_p0), [#allocation3], %s1443_s26  ;;  %s230_s8 = scalar_lea.vmem (!%p1610_p0), [#allocation2], %s1446_s7 }
  0x6e   : > { %1189 = dma.done.wait (%p1611_p4), %s227_s9, 128  }
  0x6f   : > { %1191 = vsyncadd (%p1611_p4), %s227_s9, 4294967168  ;;  %s235_s23 = sand.u32 1, %s1280_s19   ;;  %s713_s12 = sshll.u32 %s1443_s26, 7 }
  0x70   : > { %s236_s6 = scalar_lea.sflag [#allocation6], %s235_s23  ;;  %s1456_s25 = scalar_lea.vmem [#allocation5], %s713_s12 }
  0x71   : > { %1193 = dma.done.wait (%p1611_p4), %s236_s6, 2048  }
  0x72   : > { %1195 = vsyncadd (%p1611_p4), %s236_s6, 4294965248  ;;  %p1612_p11 = scmp.eq.s32.totalorder %s1280_s19, 0 }
  0x74   : > { %1197 = dma.done.wait (%p1612_p11), [#allocation6], 2048   ;;  %p1613_p13 = pmov %p1612_p11 }
  0x75   : > { %v1229_v0 = vmov 0.0|0.0   ;;  %vm1230_vm0 = vmmov 0   ;;  %v1231_v1 = vmov 0.0   ;;  %v295_v2 = vld [vmem:[#allocation7] sm:$0xff]  ;;  %v296_v3 = vld [vmem:[#allocation7 + $0x8] sm:$0xff]  ;;  %v297_v4 = vld [vmem:[#allocation7 + $0x10] sm:$0xff]  ;;  %v451_v53 = vlaneseq }
  0x76   : > { %1199 = vsyncadd (%p1613_p13), [#allocation6], 4294965248  ;;  %880 = vmatprep.subr.bf16.mxu0 %v1229_v0  ;;  %807 = vmatprep.mubr.msk.f32.mxu0 %vm1230_vm0, %v1231_v1  ;;  %v881_v5 = vpack.c.bf16 %v296_v3, %v295_v2  ;;  %v298_v6 = vld [vmem:[#allocation7 + $0x18] sm:$0xff]  ;;  %v299_v8 = vld [vmem:[#allocation7 + $0x20] sm:$0xff]  ;;  %s277_s21 = scalar_lea.vmem [#allocation9], %s1446_s7  ;;  %s719_s10 = sshll.u32 %s1280_s19, 7 }
  0x77   : > { %904 = vmatprep.subr.bf16.mxu1 %v1229_v0  ;;  %842 = vmatprep.mubr.msk.f32.mxu1 %vm1230_vm0, %v1231_v1  ;;  %v884_v7 = vpack.c.bf16 %v298_v6, %v297_v4  ;;  %v300_v9 = vld [vmem:[#allocation7 + $0x28] sm:$0xff]  ;;  %v279_v10 = vld [vmem:[%s1456_s25] sm:$0xff]  ;;  %v301_v14 = vld [vmem:[#allocation7 + $0x30] sm:$0xff]  ;;  %v452_v54 = vand.u32 127, %v451_v53  ;;  %s1521_s29 = scalar_lea.hbm %s1595_s4, %s719_s10  ;;  %s568_s20 = sshll.u32 %s277_s21, 4  ;;  %s569_s20 = int_to_ptr.vmem [resolvable:$true] %s568_s20 }
  0x78   : > { %882 = vmatpush3.bf16.msra.mxu0 %v881_v5  ;;  %v280_v11 = vld [vmem:[%s1456_s25 + $0x8] sm:$0xff]  ;;  %v887_v12 = vpack.c.bf16 %v300_v9, %v299_v8  ;;  %v302_v15 = vld [vmem:[#allocation7 + $0x38] sm:$0xff]  ;;  %v281_v16 = vld [vmem:[%s1456_s25 + $0x10] sm:$0xff]  ;;  %s542_s28 = scalar_lea.sflag [#allocation10], %s1443_s26  ;;  %s1116_s13 = scalar_lea.vmem %s569_s20, 128 }
  0x79   : > { %883 = vmatprep.subr.bf16.mxu0 %v1229_v0  ;;  %v905_v13 = vpack.c.bf16 %v280_v11, %v279_v10  ;;  %v282_v17 = vld [vmem:[%s1456_s25 + $0x18] sm:$0xff]  ;;  %v890_v18 = vpack.c.bf16 %v302_v15, %v301_v14  ;;  %v303_v19 = vld [vmem:[#allocation7 + $0x40] sm:$0xff]  ;;  %v304_v20 = vld [vmem:[#allocation7 + $0x48] sm:$0xff]  ;;  %vm453_vm1 = vcmp.lt.s32.totalorder %v452_v54, 8  ;;  %p1117_p3 = scmp.ne.s32.totalorder %s569_s20, %s1116_s13  ;;  %s1232_s5 = smov [#allocation9]  }
  0x7a   : > { %v908_v21 = vpack.c.bf16 %v282_v17, %v281_v16  ;;  %v893_v22 = vpack.c.bf16 %v304_v20, %v303_v19  ;;  %v305_v23 = vld [vmem:[#allocation7 + $0x50] sm:$0xff]  ;;  %v306_v24 = vld [vmem:[#allocation7 + $0x58] sm:$0xff]  ;;  %v283_v25 = vld [vmem:[%s1456_s25 + $0x20] sm:$0xff]  ;;  %s1120_s9 = sshll.u32 %s1232_s5, 4  ;;  %s1121_s9 = int_to_ptr.vmem [resolvable:$false] %s1120_s9 }
  0x7b   : > { %906 = vmatpush3.bf16.xpose.msra.mxu1 %v905_v13  ;;  %v284_v26 = vld [vmem:[%s1456_s25 + $0x28] sm:$0xff]  ;;  %v896_v27 = vpack.c.bf16 %v306_v24, %v305_v23  ;;  %v307_v28 = vld [vmem:[#allocation7 + $0x60] sm:$0xff]  ;;  %v309_v32 = vld [vmem:[#allocation7 + $0x70] sm:$0xff]  ;;  %p1118_p7 = pnand %p1117_p3, %p1353_p12  ;;  %p1123_p1 = scmp.lt.s32.totalorder %s569_s20, %s1121_s9 }
  0x7c   : > { %885 = vmatpush3.bf16.msra.mxu0 %v884_v7  ;;  %907 = vmatprep.subr.bf16.mxu1 %v1229_v0  ;;  %v308_v29 = vld [vmem:[#allocation7 + $0x68] sm:$0xff]  ;;  %v911_v30 = vpack.c.bf16 %v284_v26, %v283_v25  ;;  %v310_v33 = vld [vmem:[#allocation7 + $0x78] sm:$0xff]  ;;  %v285_v34 = vld [vmem:[%s1456_s25 + $0x30] sm:$0xff] }
  0x7d   : > { %886 = vmatprep.subr.bf16.mxu0 %v1229_v0  ;;  %v899_v31 = vpack.c.bf16 %v308_v29, %v307_v28  ;;  %v286_v35 = vld [vmem:[%s1456_s25 + $0x38] sm:$0xff]  ;;  %v902_v36 = vpack.c.bf16 %v310_v33, %v309_v32  ;;  %v287_v39 = vld [vmem:[%s1456_s25 + $0x40] sm:$0xff]  ;;  %v288_v40 = vld [vmem:[%s1456_s25 + $0x48] sm:$0xff]  ;;  %p1119_p9 = pneg %p1118_p7 }
  0x7e   : > { %v914_v37 = vpack.c.bf16 %v286_v35, %v285_v34  ;;  %v278_v38 = vld [vmem:[%s230_s8] sm:$0xff]  ;;  %v917_v41 = vpack.c.bf16 %v288_v40, %v287_v39  ;;  %v291_v45 = vld [vmem:[%s1456_s25 + $0x60] sm:$0xff]  ;;  %v292_v46 = vld [vmem:[%s1456_s25 + $0x68] sm:$0xff]  ;;  %s1122_s8 = scalar_lea.vmem %s1121_s9, 256 }
  0x7f   : > { %v289_v42 = vld [vmem:[%s1456_s25 + $0x50] sm:$0xff]  ;;  %v290_v43 = vld [vmem:[%s1456_s25 + $0x58] sm:$0xff]  ;;  %v923_v47 = vpack.c.bf16 %v292_v46, %v291_v45  ;;  %p1124_p5 = scmp.lt.s32.totalorder %s1122_s8, %s1116_s13 }
  0x80   : > { %888 = vmatpush3.bf16.msra.mxu0 %v887_v12  ;;  %v920_v44 = vpack.c.bf16 %v290_v43, %v289_v42  ;;  %v293_v48 = vld [vmem:[%s1456_s25 + $0x70] sm:$0xff]  ;;  %v294_v49 = vld [vmem:[%s1456_s25 + $0x78] sm:$0xff] }
  0x81   : > { %889 = vmatprep.subr.bf16.mxu0 %v1229_v0  ;;  %v926_v50 = vpack.c.bf16 %v294_v49, %v293_v48  ;;  %p1125_p2 = por %p1124_p5, %p1123_p1 }
  0x83   : > { %909 = vmatpush3.bf16.xpose.msra.mxu1 %v908_v21  ;;  %p1126_p6 = pnand %p1125_p2, %p1119_p9 }
  0x84   : > { %891 = vmatpush3.bf16.msra.mxu0 %v890_v18  ;;  %910 = vmatprep.subr.bf16.mxu1 %v1229_v0 }
  0x85   : > { %892 = vmatprep.subr.bf16.mxu0 %v1229_v0 }
  0x88   : > { %894 = vmatpush3.bf16.msra.mxu0 %v893_v22 }
  0x89   : > { %895 = vmatprep.subr.bf16.mxu0 %v1229_v0 }
  0x8b   : > { %912 = vmatpush3.bf16.xpose.msra.mxu1 %v911_v30 }
  0x8c   : > { %897 = vmatpush3.bf16.msra.mxu0 %v896_v27  ;;  %913 = vmatprep.subr.bf16.mxu1 %v1229_v0 }
  0x8d   : > { %898 = vmatprep.subr.bf16.mxu0 %v1229_v0 }
  0x90   : > { %900 = vmatpush3.bf16.msra.mxu0 %v899_v31 }
  0x91   : > { %901 = vmatprep.subr.bf16.mxu0 %v1229_v0 }
  0x93   : > { %915 = vmatpush3.bf16.xpose.msra.mxu1 %v914_v37 }
  0x94   : > { %903 = vmatpush3.bf16.msra.mxu0 %v902_v36  ;;  %916 = vmatprep.subr.bf16.mxu1 %v1229_v0 }
  0x95   : > { %928 = vmatprep.subr.bf16.mxu0 %v1229_v0 }
  0x97   : > { %808 = vmatmul.mubr.f32.vlgmr.msra.gmra.mrb[0].mxu0 %v278_v38 }
  0x98   : > { %930 = vmatpush3.bf16.msra.mxu0 %v905_v13  ;;  %877 = vmatprep.mubr.msk.f32.mxu0 %vm1230_vm0, %v1231_v1 }
  0x99   : > { %931 = vmatprep.subr.bf16.mxu0 %v1229_v0 }
  0x9b   : > { %918 = vmatpush3.bf16.xpose.msra.mxu1 %v917_v41 }
  0x9c   : > { %933 = vmatpush3.bf16.msra.mxu0 %v908_v21  ;;  %919 = vmatprep.subr.bf16.mxu1 %v1229_v0 }
  0x9d   : > { %934 = vmatprep.subr.bf16.mxu0 %v1229_v0 }
  0xa0   : > { %936 = vmatpush3.bf16.msra.mxu0 %v911_v30 }
  0xa1   : > { %937 = vmatprep.subr.bf16.mxu0 %v1229_v0 }
  0xa3   : > { %921 = vmatpush3.bf16.xpose.msra.mxu1 %v920_v44 }
  0xa4   : > { %939 = vmatpush3.bf16.msra.mxu0 %v914_v37  ;;  %922 = vmatprep.subr.bf16.mxu1 %v1229_v0 }
  0xa5   : > { %940 = vmatprep.subr.bf16.mxu0 %v1229_v0 }
  0xa8   : > { %942 = vmatpush3.bf16.msra.mxu0 %v917_v41 }
  0xa9   : > { %943 = vmatprep.subr.bf16.mxu0 %v1229_v0 }
  0xab   : > { %924 = vmatpush3.bf16.xpose.msra.mxu1 %v923_v47 }
  0xac   : > { %945 = vmatpush3.bf16.msra.mxu0 %v920_v44  ;;  %925 = vmatprep.subr.bf16.mxu1 %v1229_v0 }
  0xad   : > { %946 = vmatprep.subr.bf16.mxu0 %v1229_v0 }
  0xb0   : > { %948 = vmatpush3.bf16.msra.mxu0 %v923_v47 }
  0xb1   : > { %949 = vmatprep.subr.bf16.mxu0 %v1229_v0 }
  0xb3   : > { %927 = vmatpush3.bf16.xpose.msra.mxu1 %v926_v50 }
  0xb4   : > { %951 = vmatpush3.bf16.msra.mxu0 %v926_v50 }
 0x16a   : > { %v377_v51 = vpop.f32.mrb[0].mxu0 }
 0x16b   : > { %v809_v52 = vpop.f32.mrb[1].mxu0  ;;  %843 = vmatmul.mubr.f32.vlgmr.msra.gmra.mrb[0].mxu1 %v377_v51 }
 0x23e   : > { %v447_v55 = vpop.f32.mrb[0].mxu1 }
 0x23f   : > { %v844_v56 = vpop.f32.mrb[1].mxu1  ;;  %v454_v57 = vsel %vm453_vm1, %v447_v55, -1e+09 }
 0x240   : > { %455 = vmax.xlane.f32.xlu0 %v454_v57 }
 0x2cd   : > { %v456_v58 = vpop.xlane.xlu0 %455 }
 0x2ce   : > { %v457_v59 = vsub.f32 %v454_v57, %v456_v58 }
 0x2d0   : > { %v458_v60 = vmul.f32 1.442695, %v457_v59 }
 0x2d2   : > { %1024 = vpow2.f32 %v458_v60 }
 0x2dc   : > { %v1025_v61 = vpop.eup %1024 }
 0x2dd   : > { %460 = vadd.xlane.f32.xlu0 %v1025_v61 }
 0x36a   : > { %v461_v62 = vpop.xlane.xlu0 %460 }
 0x36b   : > { %1026 = vrcp.f32 %v461_v62 }
 0x375   : > { %v1027_v63 = vpop.eup %1026 }
 0x376   : > { %v463_v0 = vmul.f32 %v1027_v63, %v1025_v61 }
 0x378   : > { %878 = vmatmul.mubr.f32.vlgmr.msra.gmra.mrb[2].mxu0 %v463_v0  ;;  %464 = vst [vmem:[%s277_s21] sm:$0xff] %v463_v0 }
 0x379   : > { %1129 = shalt.err (!%p1126_p6)
}
 0x37a   : > { %s1130_s23 = scalar_lea.hbm %s1521_s29, 128  ;;  %s1134_s25 = scalar_lea.hbm %s1595_s4, 256 }
 0x37b   : > { %p1131_p8 = scmp.ne.s32.totalorder %s1521_s29, %s1130_s23  ;;  %p1135_p4 = scmp.lt.u32.totalorder %s1521_s29, %s1595_s4 }
 0x37c   : > { %p1136_p11 = scmp.lt.u32.totalorder %s1134_s25, %s1130_s23  ;;  %p1138_p3 = scmp.lt.u32.totalorder %s1130_s23, %s1521_s29 }
 0x37d   : > { %p1132_p10 = pnand %p1131_p8, %p1353_p12 }
 0x37e   : > { %p1137_p13 = por %p1136_p11, %p1135_p4 }
 0x37f   : > { %p1133_p0 = pneg %p1132_p10 }
 0x380   : > { %p1139_p7 = por %p1138_p3, %p1137_p13 }
 0x382   : > { %p1140_p9 = pnand %p1139_p7, %p1133_p0 }
 0x384   : > { %1143 = shalt.err (!%p1140_p9)
}
 0x385   : > { %961 = dma.vmem_to_hbm [thread:$0]  (%p1353_p12), %s569_s20, 128, %s1521_s29, %s542_s28  }
 0x386   : > { %s270_s14 = scalar_lea.vmem [#allocation8], %s1446_s7  ;;  %s1549_s8 = scalar_lea.hbm %s1594_s3, %s719_s10 }
 0x387   : > { %s555_s13 = sshll.u32 %s270_s14, 4  ;;  %s537_s23 = scalar_lea.sflag [#allocation4], %s1443_s26  ;;  %s1542_s13 = int_to_ptr.vmem [resolvable:$true] %s555_s13 }
 0x388   : > { %s1144_s12 = scalar_lea.vmem %s1542_s13, 128  ;;  %s1233_s7 = smov [#allocation8]  }
 0x389   : > { %p1145_p1 = scmp.ne.s32.totalorder %s1542_s13, %s1144_s12  ;;  %s1148_s29 = sshll.u32 %s1233_s7, 4  ;;  %s1149_s29 = int_to_ptr.vmem [resolvable:$false] %s1148_s29 }
 0x38a   : > { %s1150_s19 = scalar_lea.vmem %s1149_s29, 256  ;;  %p1151_p6 = scmp.lt.s32.totalorder %s1542_s13, %s1149_s29 }
 0x38b   : > { %p1146_p5 = pnand %p1145_p1, %p1353_p12  ;;  %p1152_p8 = scmp.lt.s32.totalorder %s1150_s19, %s1144_s12 }
 0x38d   : > { %p1147_p2 = pneg %p1146_p5  ;;  %p1153_p10 = por %p1152_p8, %p1151_p6 }
 0x38f   : > { %p1154_p0 = pnand %p1153_p10, %p1147_p2 }
 0x44b   : > { %v531_v1 = vpop.f32.mrb[2].mxu0 }
 0x44c   : > { %535 = vst [vmem:[%s270_s14] sm:$0xff] %v531_v1  ;;  %v879_v2 = vpop.f32.mrb[3].mxu0 }
 0x44d   : > { %1157 = shalt.err (!%p1154_p0)
}
 0x44e   : > { %s1158_s26 = scalar_lea.hbm %s1549_s8, 128  ;;  %s1162_s28 = scalar_lea.hbm %s1594_s3, 256 }
 0x44f   : > { %p1159_p4 = scmp.ne.s32.totalorder %s1549_s8, %s1158_s26  ;;  %p1163_p3 = scmp.lt.u32.totalorder %s1549_s8, %s1594_s3 }
 0x450   : > { %p1164_p7 = scmp.lt.u32.totalorder %s1162_s28, %s1158_s26  ;;  %p1166_p1 = scmp.lt.u32.totalorder %s1158_s26, %s1549_s8 }
 0x451   : > { %p1160_p11 = pnand %p1159_p4, %p1353_p12 }
 0x452   : > { %p1165_p9 = por %p1164_p7, %p1163_p3 }
 0x453   : > { %p1161_p13 = pneg %p1160_p11 }
 0x454   : > { %p1167_p5 = por %p1166_p1, %p1165_p9 }
 0x456   : > { %p1168_p2 = pnand %p1167_p5, %p1161_p13 }
 0x458   : > { %1171 = shalt.err (!%p1168_p2)
}
 0x459   : > { %960 = dma.vmem_to_hbm [thread:$0]  (%p1353_p12), %s1542_s13, 128, %s1549_s8, %s537_s23  }
 0x45a PF: > { %s580_s21 = sand.u32 1, %s1210_s15   ;;  %p1614_p6 = scmp.ne.s32.totalorder %s1602_s22, 0 }
 0x45b   : > { %p1615_p8 = scmp.ge.s32.totalorder %s1222_s18, 2  ;;  %s581_s11 = scalar_lea.sflag [#allocation4], %s580_s21 }
 0x45d   : > { %p976_p10 = pnand %p1615_p8, %p1614_p6 }
 0x45f   : > { %1201 = dma.done.wait (!%p976_p10), %s581_s11, 128  }
 0x460   : > { %1203 = vsyncadd (!%p976_p10), %s581_s11, 4294967168  ;;  %s590_s14 = scalar_lea.sflag [#allocation10], %s580_s21 }
 0x461   : > { %1205 = dma.done.wait (!%p976_p10), %s590_s14, 128  }
 0x462   : > { %1207 = vsyncadd (!%p976_p10), %s590_s14, 4294967168  ;;  %p24_p12 = scmp.ge.s32.totalorder %s1315_s27, 4   ;;  %s1616_s15 = smov %s1214_s16 }
 0x463   : > { %s1617_s16 = smov %s1218_s17  ;;  %s1618_s17 = smov %s1349_s24 }
 0x464   : > { %s1619_s18 = smov %s1315_s27  ;;  %26 = sbr.rel (!%p24_p12) target bundleno = 9 (0x9), region = 111 }
 0x46b   :  { %595 = vsyncpa [#allocation3], 1 }
 0x46c   :  { %597 = vsyncpa [#allocation3 + $0x1], 1 }
 0x46d   :  { %598 = vsyncpa [#allocation6], 1 }
 0x46e   :  { %600 = vsyncpa [#allocation6 + $0x1], 1 }
 0x46f   :  { %601 = vsyncpa [#allocation4], 1 }
 0x470   :  { %603 = vsyncpa [#allocation4 + $0x1], 1 }
 0x471   :  { %604 = vsyncpa [#allocation10], 1 }
 0x472   :  { %606 = vsyncpa [#allocation10 + $0x1], 1 }

</bundles_post_ra>
